<compile_context>
chip_gen: v7x
topology: tpu7x:2x2x1
jax: 0.10.0
libtpu: 0.0.40
codegen_flags: <defaults>
</compile_context>

<pallas_src>
import functools

import jax
import jax.numpy as jnp
from jax.experimental import pallas as pl
from jax.experimental.pallas import tpu as pltpu


def _round_up(x, m):
    return -(-x // m) * m


def _round_down(x, m):
    return (x // m) * m


def _lane_fold_128(x):
    """Fold (rows, T) -> (rows, 128) by summing 128-lane chunks (T % 128 == 0).

    Two-level fold keeps the Python unroll small for big tiles; every slice is
    a 128-lane-aligned static slice (no cross-lane shuffles).
    """
    t = x.shape[-1]
    step = 2048
    if t > step and t % step == 0:
        acc = x[:, :step]
        for k in range(1, t // step):
            acc = acc + x[:, k * step:(k + 1) * step]
        x, t = acc, step
    acc = x[:, :128]
    for k in range(1, t // 128):
        acc = acc + x[:, k * 128:(k + 1) * 128]
    return acc


def _ce_partial_kernel(labels_ref, *args, ignore_index, hw, has_weight):
    """One (C, tile) pixel tile -> (1, 256) partial: [loss sum | weight denom]."""
    if has_weight:
        weight_ref, logits_ref, out_ref = args
    else:
        logits_ref, out_ref = args

    logits = logits_ref[...].astype(jnp.float32)               # (C, T)
    labels = labels_ref[...]                                    # (1, T) int32
    c, t = logits.shape

    # ragged-tail mask: the last tile may hang off the end of H*W and read
    # garbage lanes; combine with the ignore_index mask.
    lane = jax.lax.broadcasted_iota(jnp.int32, (1, t), 1)
    in_range = (pl.program_id(1) * t + lane) < hw
    valid = jnp.logical_and(labels != ignore_index, in_range)   # (1, T)

    # numerically-stable -log-softmax over the class (sublane) axis
    m = jnp.max(logits, axis=0, keepdims=True)                  # (1, T)
    lse = m + jnp.log(jnp.sum(jnp.exp(logits - m), axis=0, keepdims=True))
    neg_logp = lse - logits                                     # (C, T)

    onehot = jax.lax.broadcasted_iota(jnp.int32, (c, t), 0) == labels
    sel = jnp.logical_and(onehot, valid)                        # (C, T)
    # Mask with jnp.where (not multiply): garbage tail lanes may hold NaN/Inf.
    loss_ct = jnp.where(sel, neg_logp, 0.0)                     # (C, T)

    if has_weight:
        w = weight_ref[...].astype(jnp.float32)                 # (C, 1)
        loss_ct = loss_ct * w
        den_ct = sel.astype(jnp.float32) * w
        loss_p = jnp.sum(_lane_fold_128(loss_ct), axis=0, keepdims=True)
        den_p = jnp.sum(_lane_fold_128(den_ct), axis=0, keepdims=True)
    else:
        # fast path: denominator is just the count of valid pixels
        loss_p = jnp.sum(_lane_fold_128(loss_ct), axis=0, keepdims=True)
        den_p = _lane_fold_128(valid.astype(jnp.float32))

    out_ref[:, 0:128] = loss_p
    out_ref[:, 128:256] = den_p


def _pick_tile(c, hw, batch, target_bytes=3 * 1024 * 1024):
    """Pixel-tile (lane) width, sized by bytes of the f32 logits block."""
    tile = max(128, _round_down(target_bytes // (c * 4), 128))
    if batch == 1:
        # keep several pixel tiles so ("parallel","parallel") has work to
        # shard across v7x's two TensorCores even for a single image
        tile = min(tile, max(128, _round_up(pl.cdiv(hw, 8), 128)))
    tile = min(tile, _round_up(hw, 128))
    if tile > 2048:
        tile = max(2048, _round_down(tile, 2048))   # keep lane-fold unroll small
    return tile


def _ce_partials(preds, labels, *, weight, ignore_index):
    """Per-head partial sums: (sum of w[y]*CE over valid pixels, sum of w[y])."""
    n, c, h, w = preds.shape
    hw = h * w
    logits = preds.reshape(n, c, hw)                  # free reshape, no transpose
    lab = labels.reshape(n, 1, hw).astype(jnp.int32)

    if hw < 128:                                      # tiny-input guard only
        pad = 128 - hw
        logits = jnp.pad(logits, ((0, 0), (0, 0), (0, pad)))
        lab = jnp.pad(lab, ((0, 0), (0, 0), (0, pad)),
                      constant_values=ignore_index)
        hw = 128

    tile = _pick_tile(c, hw, n)
    num_tiles = pl.cdiv(hw, tile)
    has_weight = weight is not None

    in_specs = [pl.BlockSpec((None, 1, tile), lambda i, j: (i, 0, j))]   # labels
    args = [lab]
    if has_weight:
        in_specs.append(pl.BlockSpec((c, 1), lambda i, j: (0, 0)))       # weights
        args.append(jnp.asarray(weight, jnp.float32).reshape(c, 1))
    in_specs.append(pl.BlockSpec((None, c, tile), lambda i, j: (i, 0, j)))  # logits
    args.append(logits)

    partials = pl.pallas_call(
        functools.partial(_ce_partial_kernel, ignore_index=ignore_index,
                          hw=hw, has_weight=has_weight),
        grid=(n, num_tiles),
        in_specs=in_specs,
        out_specs=pl.BlockSpec((None, 1, 256), lambda i, j: (i, j, 0)),
        out_shape=jax.ShapeDtypeStruct((n, num_tiles, 256), jnp.float32),
        compiler_params=pltpu.CompilerParams(
            dimension_semantics=("parallel", "parallel"),
            vmem_limit_bytes=48 * 1024 * 1024),
    )(*args)

    return jnp.sum(partials[..., :128]), jnp.sum(partials[..., 128:])


def _cross_entropy_single(preds, labels, *, weight=None, ignore_index=-100):
    # nn.CrossEntropyLoss 'mean': sum(w[y]*ce) / sum(w[y]) over non-ignored
    # pixels.  (All-ignored input gives 0/0 = NaN, matching PyTorch.)
    s, d = _ce_partials(preds, labels, weight=weight, ignore_index=ignore_index)
    return s / d


def cross_entropy(preds, labels, *, weight=None, aux_weights=(1, 0.4, 0.4),
                  ignore_index=-100):
    """Forward pass of the CrossEntropy module (preds may be a tuple of heads)."""
    if isinstance(preds, (tuple, list)):
        # TODO(synk): heads are kept as separate pallas_calls -- fusing via
        # jnp.stack would add a full extra HBM copy of every head's logits.
        return sum(wt * _cross_entropy_single(p, labels, weight=weight,
                                              ignore_index=ignore_index)
                   for p, wt in zip(preds, aux_weights))
    return _cross_entropy_single(preds, labels, weight=weight,
                                 ignore_index=ignore_index)


def _reference_ce(preds, labels, *, weight=None, ignore_index=-100):
    """Pure-JAX reference matching nn.CrossEntropyLoss(weight, reduction='mean')."""
    n, c, h, w = preds.shape
    logits = jnp.transpose(preds, (0, 2, 3, 1)).reshape(-1, c).astype(jnp.float32)
    lab = labels.reshape(-1).astype(jnp.int32)
    valid = lab != ignore_index
    safe = jnp.where(valid, lab, 0)
    logp = jax.nn.log_softmax(logits, axis=-1)
    ce = -jnp.take_along_axis(logp, safe[:, None], axis=-1)[:, 0]
    wvec = (jnp.ones((c,), jnp.float32) if weight is None
            else jnp.asarray(weight, jnp.float32))
    wpix = jnp.where(valid, wvec[safe], 0.0)
    return jnp.sum(wpix * ce) / jnp.sum(wpix)


if __name__ == "__main__":
    key = jax.random.PRNGKey(0)
    ks = jax.random.split(key, 8)

    # 1) basic unweighted path (N, C, H, W) = (2, 4, 16, 16)
    N, C, H, W = 2, 4, 16, 16
    preds = jax.random.normal(ks[0], (N, C, H, W), dtype=jnp.float32)
    labels = jax.random.randint(ks[1], (N, H, W), 0, C, dtype=jnp.int32)
    out = jax.block_until_ready(cross_entropy(preds, labels))
    ref = jax.block_until_ready(_reference_ce(preds, labels))
    assert jnp.allclose(out, ref, rtol=1e-5, atol=1e-5), (out, ref)

    # 2) per-class weights + ignore_index + ragged spatial extent (13*17=221,
    #    not a multiple of 128) + single image (exercises N==1 tile cap)
    N2, C2, H2, W2 = 1, 6, 13, 17
    preds2 = jax.random.normal(ks[2], (N2, C2, H2, W2), dtype=jnp.float32)
    labels2 = jax.random.randint(ks[3], (N2, H2, W2), 0, C2, dtype=jnp.int32)
    drop = jax.random.bernoulli(ks[4], 0.2, labels2.shape)
    labels2 = jnp.where(drop, -100, labels2)
    wvec = jnp.array([0.5, 1.0, 2.0, 1.5, 0.25, 3.0], jnp.float32)
    out2 = jax.block_until_ready(cross_entropy(preds2, labels2, weight=wvec))
    ref2 = jax.block_until_ready(_reference_ce(preds2, labels2, weight=wvec))
    assert jnp.allclose(out2, ref2, rtol=1e-5, atol=1e-5), (out2, ref2)

    # 3) tuple-of-aux-heads path with default aux_weights = (1, 0.4, 0.4)
    aux1 = jax.random.normal(ks[5], (N, C, H, W), dtype=jnp.float32)
    aux2 = jax.random.normal(ks[6], (N, C, H, W), dtype=jnp.float32)
    out_t = jax.block_until_ready(cross_entropy((preds, aux1, aux2), labels))
    ref_t = jax.block_until_ready(_reference_ce(preds, labels)
                                  + 0.4 * _reference_ce(aux1, labels)
                                  + 0.4 * _reference_ce(aux2, labels))
    assert jnp.allclose(out_t, ref_t, rtol=1e-5, atol=1e-5), (out_t, ref_t)

    print("KERNEL_OK")
</pallas_src>

<mosaic_0001>
module attributes {stable_mosaic.version = 11 : i64} {
  func.func @_ce_partial_kernel(%arg0: i32, %arg1: i32, %arg2: memref<1x1x256xi32, #tpu.memory_space<vmem>>, %arg3: memref<1x4x256xf32, #tpu.memory_space<vmem>>, %arg4: memref<1x1x256xf32, #tpu.memory_space<vmem>>) attributes {dimension_semantics = [#tpu.dimension_semantics<parallel>, #tpu.dimension_semantics<parallel>], iteration_bounds = array<i64: 2, 1>, scalar_prefetch = 0 : i64, scratch_operands = 0 : i64, tpu.core_type = #tpu.core_type<tc>, window_params = [{transform_indices = @transform_0, window_bounds = array<i64: 1, 1, 256>}, {transform_indices = @transform_1, window_bounds = array<i64: 1, 4, 256>}, {transform_indices = @transform_2, window_bounds = array<i64: 1, 1, 256>}]} {
    %c0 = arith.constant 0 : index
    %c0_0 = arith.constant 0 : index
    %c0_1 = arith.constant 0 : index
    %0 = vector.load %arg3[%c0, %c0_0, %c0_1] : memref<1x4x256xf32, #tpu.memory_space<vmem>>, vector<1x4x256xf32>
    %1 = vector.shape_cast %0 : vector<1x4x256xf32> to vector<4x256xf32>
    %c0_2 = arith.constant 0 : index
    %c0_3 = arith.constant 0 : index
    %c0_4 = arith.constant 0 : index
    %2 = vector.load %arg2[%c0_2, %c0_3, %c0_4] : memref<1x1x256xi32, #tpu.memory_space<vmem>>, vector<1x1x256xi32>
    %3 = vector.shape_cast %2 : vector<1x1x256xi32> to vector<1x256xi32>
    %4 = tpu.iota {dimensions = array<i32: 1>} : vector<1x256xi32>
    %c256_i32 = arith.constant 256 : i32
    %5 = arith.muli %arg1, %c256_i32 : i32
    %6 = vector.broadcast %5 : i32 to vector<1x256xi32>
    %7 = arith.addi %6, %4 : vector<1x256xi32>
    %c256_i32_5 = arith.constant 256 : i32
    %8 = vector.broadcast %c256_i32_5 : i32 to vector<1x256xi32>
    %9 = arith.cmpi slt, %7, %8 : vector<1x256xi32>
    %c-100_i32 = arith.constant -100 : i32
    %10 = vector.broadcast %c-100_i32 : i32 to vector<1x256xi32>
    %11 = arith.cmpi ne, %3, %10 : vector<1x256xi32>
    %12 = arith.andi %11, %9 : vector<1x256xi1>
    %cst = arith.constant dense<0xFF800000> : vector<256xf32>
    %13 = vector.multi_reduction <maximumf>, %1, %cst [0] : vector<4x256xf32> to vector<256xf32>
    %14 = vector.shape_cast %13 : vector<256xf32> to vector<1x256xf32>
    %15 = vector.broadcast %14 : vector<1x256xf32> to vector<4x256xf32>
    %16 = arith.subf %1, %15 : vector<4x256xf32>
    %17 = math.exp %16 : vector<4x256xf32>
    %cst_6 = arith.constant dense<0.000000e+00> : vector<256xf32>
    %18 = vector.multi_reduction <add>, %17, %cst_6 [0] : vector<4x256xf32> to vector<256xf32>
    %19 = vector.shape_cast %18 : vector<256xf32> to vector<1x256xf32>
    %20 = math.log %19 : vector<1x256xf32>
    %21 = arith.addf %14, %20 : vector<1x256xf32>
    %22 = vector.broadcast %21 : vector<1x256xf32> to vector<4x256xf32>
    %23 = arith.subf %22, %1 : vector<4x256xf32>
    %24 = tpu.iota {dimensions = array<i32: 0>} : vector<4x256xi32>
    %25 = vector.broadcast %3 : vector<1x256xi32> to vector<4x256xi32>
    %26 = arith.cmpi eq, %24, %25 : vector<4x256xi32>
    %27 = vector.broadcast %12 : vector<1x256xi1> to vector<4x256xi1>
    %28 = arith.andi %26, %27 : vector<4x256xi1>
    %cst_7 = arith.constant 0.000000e+00 : f32
    %29 = vector.broadcast %cst_7 : f32 to vector<4x256xf32>
    %30 = arith.select %28, %23, %29 : vector<4x256xi1>, vector<4x256xf32>
    %31 = vector.extract_strided_slice %30 {offsets = [0, 0], sizes = [4, 128], strides = [1, 1]} : vector<4x256xf32> to vector<4x128xf32>
    %32 = vector.extract_strided_slice %30 {offsets = [0, 128], sizes = [4, 128], strides = [1, 1]} : vector<4x256xf32> to vector<4x128xf32>
    %33 = arith.addf %31, %32 : vector<4x128xf32>
    %cst_8 = arith.constant dense<0.000000e+00> : vector<128xf32>
    %34 = vector.multi_reduction <add>, %33, %cst_8 [0] : vector<4x128xf32> to vector<128xf32>
    %35 = vector.shape_cast %34 : vector<128xf32> to vector<1x128xf32>
    %36 = arith.extui %12 : vector<1x256xi1> to vector<1x256xi32>
    %37 = arith.sitofp %36 : vector<1x256xi32> to vector<1x256xf32>
    %38 = vector.extract_strided_slice %37 {offsets = [0, 0], sizes = [1, 128], strides = [1, 1]} : vector<1x256xf32> to vector<1x128xf32>
    %39 = vector.extract_strided_slice %37 {offsets = [0, 128], sizes = [1, 128], strides = [1, 1]} : vector<1x256xf32> to vector<1x128xf32>
    %40 = arith.addf %38, %39 : vector<1x128xf32>
    %c0_9 = arith.constant 0 : index
    %c0_10 = arith.constant 0 : index
    %c0_11 = arith.constant 0 : index
    %41 = vector.load %arg4[%c0_9, %c0_10, %c0_11] : memref<1x1x256xf32, #tpu.memory_space<vmem>>, vector<1x1x128xf32>
    %42 = vector.shape_cast %41 : vector<1x1x128xf32> to vector<1x128xf32>
    %43 = vector.shape_cast %35 : vector<1x128xf32> to vector<1x1x128xf32>
    tpu.vector_store %arg4[%c0_9, %c0_10, %c0_11], %43 {strides = array<i32>} : memref<1x1x256xf32, #tpu.memory_space<vmem>>, vector<1x1x128xf32>,
    %c0_12 = arith.constant 0 : index
    %c0_13 = arith.constant 0 : index
    %c128 = arith.constant 128 : index
    %44 = vector.load %arg4[%c0_12, %c0_13, %c128] : memref<1x1x256xf32, #tpu.memory_space<vmem>>, vector<1x1x128xf32>
    %45 = vector.shape_cast %44 : vector<1x1x128xf32> to vector<1x128xf32>
    %46 = vector.shape_cast %40 : vector<1x128xf32> to vector<1x1x128xf32>
    tpu.vector_store %arg4[%c0_12, %c0_13, %c128], %46 {strides = array<i32>} : memref<1x1x256xf32, #tpu.memory_space<vmem>>, vector<1x1x128xf32>,
    return
  }
  func.func @transform_0(%arg0: i32, %arg1: i32) -> (i32, i32, i32) {
    %c0_i32 = arith.constant 0 : i32
    %c0_i32_0 = arith.constant 0 : i32
    return %arg0, %c0_i32, %arg1 : i32, i32, i32
  }
  func.func @transform_1(%arg0: i32, %arg1: i32) -> (i32, i32, i32) {
    %c0_i32 = arith.constant 0 : i32
    %c0_i32_0 = arith.constant 0 : i32
    return %arg0, %c0_i32, %arg1 : i32, i32, i32
  }
  func.func @transform_2(%arg0: i32, %arg1: i32) -> (i32, i32, i32) {
    %c0_i32 = arith.constant 0 : i32
    %c0_i32_0 = arith.constant 0 : i32
    return %arg0, %arg1, %c0_i32 : i32, i32, i32
  }
}

</mosaic_0001>

<bundles_post_ra>
// kernel: tpu_custom_call.1
= control target key start
LH: loop header
LB: loop body
LE: loop exit
PB: predicated region body
PF: predicated region fallthrough
CT: control target
= control target key end

     0   :  { %7 = vsyncpa [#allocation3], 0  ;;  %s1010_s0 = inlined_call_operand.hbm [shape: s32[2,1,256], index: 0, kind: input, shape index: {}]   ;;  %s1011_s1 = inlined_call_operand.hbm [shape: f32[2,4,256], index: 1, kind: input, shape index: {}]   ;;  %s1012_s2 = inlined_call_operand.hbm [shape: f32[2,1,256], index: 2, kind: output, shape index: {}]  }
   0x1   :  { %9 = vsyncpa [#allocation3 + $0x1], 0 }
   0x2   :  { %10 = vsyncpa [#allocation6], 0 }
   0x3   :  { %12 = vsyncpa [#allocation6 + $0x1], 0 }
   0x4   :  { %13 = vsyncpa [#allocation4], 0 }
   0x5   :  { %15 = vsyncpa [#allocation4 + $0x1], 0  ;;  %s747_s9 = smov 0   ;;  %s749_s10 = smov 0  }
   0x6   :  { %s751_s11 = smov 0   ;;  %s753_s12 = smov 0  }
   0x7   :  { %s755_s13 = smov 0   ;;  %s757_s14 = smov 0  }
   0x8 LB: > { %s476_s15 = sadd.s32 4294967295, %s723_s14   ;;  %s477_s16 = sadd.s32 4294967294, %s723_s14   ;;  %s723_s14 = sphi %s757_s14, %s21_s14   ;;  %s719_s13 = sphi %s755_s13, %s1036_s13   ;;  %s715_s12 = sphi %s753_s12, %s1035_s12   ;;  %s711_s11 = sphi %s751_s11, %s1034_s11   ;;  %s707_s10 = sphi %s749_s10, %s1033_s10   ;;  %s703_s9 = sphi %s747_s9, %s1032_s9  }
   0x9   : > { %s33_s17 = sadd.s32 1, %s719_s13  ;;  %s42_s18 = sadd.s32 1, %s711_s11 }
   0xa   : > { %p35_p0 = scmp.ge.s32.totalorder %s33_s17, 2  ;;  %p49_p1 = scmp.ne.s32.totalorder %s711_s11, %s707_s10 }
   0xb   : > { %p50_p2 = scmp.eq.s32.totalorder %s723_s14, 0  ;;  %p55_p3 = scmp.ne.s32.totalorder %s707_s10, %s703_s9 }
   0xc   : > { %s1038_s17 = smov (%p35_p0, %s33_s17), 0  ;;  %p56_p5 = scmp.eq.s32.totalorder %s476_s15, 0 }
   0xd   : > { %p788_p4 = por %p50_p2, %p49_p1  ;;  %s37_s20 = ssub.s32 %s719_s13, %s1038_s17 }
   0xe   : > { %p109_p6 = scmp.eq.s32.totalorder %s476_s15, 1  ;;  %p40_p7 = scmp.eq.s32.totalorder %s37_s20, 0 }
   0xf   : > { %p794_p8 = por %p56_p5, %p55_p3  ;;  %p115_p10 = scmp.eq.s32.totalorder %s477_s16, 1 }
  0x10   : > { %p798_p9 = por %p109_p6, %p49_p1  ;;  %p516_p13 = scmp.lt.s32.totalorder %s723_s14, 2 }
  0x11   : > { %s1016_s21 = scalar_select %p794_p8, 1, 0 }
  0x12   : > { %s1017_s22 = scalar_select %p798_p9, 1, 0 }
  0x13   : > { %s803_s23 = scalar_select %p40_p7, %s711_s11, %s42_s18  }
  0x14   : > { %p805_p11 = por %p115_p10, %p55_p3  ;;  %s812_s25 = sand.u32 1, %s711_s11  }
  0x15   : > { %s480_s26 = sshll.u32 %s812_s25, 1  ;;  %s496_s27 = sshll.u32 %s719_s13, 5 }
  0x16   : > { %s1018_s24 = scalar_select %p805_p11, 1, 0 }
  0x17   : > { %s819_s30 = scalar_lea.hbm %s1010_s0, %s496_s27  ;;  %s139_s3 = scalar_lea.vmem [#allocation2], %s480_s26 }
  0x18   : > { %s149_s4 = sshll.u32 %s139_s3, 4  ;;  %p825_p0 = pnand %p516_p13, %p788_p4  ;;  %s821_s4 = int_to_ptr.vmem [resolvable:$true] %s149_s4 }
  0x19   : > { %s136_s6 = scalar_lea.sflag [#allocation3], %s812_s25  ;;  %s577_s7 = scalar_lea.hbm %s819_s30, 32 }
  0x1a   : > { %p578_p3 = scmp.ne.s32.totalorder %s819_s30, %s577_s7  ;;  %p579_p5 = pneg %p825_p0 }
  0x1b   : > { %s582_s16 = scalar_lea.hbm %s1010_s0, 64  ;;  %p583_p4 = scmp.lt.u32.totalorder %s819_s30, %s1010_s0 }
  0x1c   : > { %p580_p6 = pnand %p579_p5, %p578_p3  ;;  %p584_p10 = scmp.lt.u32.totalorder %s582_s16, %s577_s7 }
  0x1d   : > { %p586_p12 = scmp.lt.u32.totalorder %s577_s7, %s819_s30 }
  0x1e   : > { %p581_p7 = pneg %p580_p6  ;;  %p585_p13 = por %p584_p10, %p583_p4 }
  0x20   : > { %p587_p1 = por %p586_p12, %p585_p13 }
  0x22   : > { %p588_p2 = pnand %p587_p1, %p581_p7 }
  0x24   : > { %591 = shalt.err (!%p588_p2)
}
  0x25   : > { %s592_s20 = scalar_lea.vmem %s821_s4, 32  ;;  %s725_s26 = smov [#allocation2]  }
  0x26   : > { %p593_p3 = scmp.ne.s32.totalorder %s821_s4, %s592_s20  ;;  %s597_s27 = sshll.u32 %s725_s26, 4  ;;  %s598_s27 = int_to_ptr.vmem [resolvable:$false] %s597_s27 }
  0x27   : > { %s599_s28 = scalar_lea.vmem %s598_s27, 64  ;;  %p600_p9 = scmp.lt.s32.totalorder %s821_s4, %s598_s27 }
  0x28   : > { %p595_p6 = pnand %p593_p3, %p579_p5  ;;  %p601_p4 = scmp.lt.s32.totalorder %s599_s28, %s592_s20 }
  0x2a   : > { %p596_p11 = pneg %p595_p6  ;;  %p602_p10 = por %p601_p4, %p600_p9 }
  0x2c   : > { %p603_p12 = pnand %p602_p10, %p596_p11 }
  0x2e   : > { %606 = shalt.err (!%p603_p12)
}
  0x2f   : > { %508 = dma.hbm_to_vmem [thread:$0]  (!%p825_p0), %s819_s30, 32, %s821_s4, %s136_s6  }
  0x30   : > { %p1020_p1 = scmp.lt.s32.totalorder %s723_s14, 3  ;;  %p1021_p2 = scmp.ge.s32.totalorder %s723_s14, 1 }
  0x31   : > { %s483_s3 = sshll.u32 %s812_s25, 3  ;;  %s497_s7 = sshll.u32 %s719_s13, 7 }
  0x32   : > { %p861_p7 = pnand %p1021_p2, %p1020_p1  ;;  %s870_s16 = scalar_lea.hbm %s1011_s1, %s497_s7 }
  0x33   : > { %s160_s18 = scalar_lea.vmem [#allocation5], %s483_s3  ;;  %s157_s30 = scalar_lea.sflag [#allocation6], %s812_s25 }
  0x34   : > { %s1022_s29 = scalar_select %p861_p7, 1, 0 }
  0x35   : > { %s170_s19 = sshll.u32 %s160_s18, 4  ;;  %s607_s4 = scalar_lea.hbm %s870_s16, 128  ;;  %s171_s19 = int_to_ptr.vmem [resolvable:$true] %s170_s19 }
  0x36   : > { %p608_p9 = scmp.ne.s32.totalorder %s870_s16, %s607_s4  ;;  %s612_s26 = scalar_lea.hbm %s1011_s1, 256 }
  0x37   : > { %p613_p3 = scmp.lt.u32.totalorder %s870_s16, %s1011_s1  ;;  %p614_p6 = scmp.lt.u32.totalorder %s612_s26, %s607_s4 }
  0x38   : > { %p610_p11 = pnand %p608_p9, %p579_p5  ;;  %p616_p10 = scmp.lt.u32.totalorder %s607_s4, %s870_s16 }
  0x39   : > { %p615_p4 = por %p614_p6, %p613_p3 }
  0x3a   : > { %p611_p13 = pneg %p610_p11 }
  0x3b   : > { %p617_p12 = por %p616_p10, %p615_p4 }
  0x3d   : > { %p618_p1 = pnand %p617_p12, %p611_p13 }
  0x3f   : > { %621 = shalt.err (!%p618_p1)
}
  0x40   : > { %s622_s25 = scalar_lea.vmem %s171_s19, 128  ;;  %s726_s3 = smov [#allocation5]  }
  0x41   : > { %p623_p2 = scmp.ne.s32.totalorder %s171_s19, %s622_s25  ;;  %s627_s7 = sshll.u32 %s726_s3, 4  ;;  %s628_s7 = int_to_ptr.vmem [resolvable:$false] %s627_s7 }
  0x42   : > { %s629_s8 = scalar_lea.vmem %s628_s7, 256  ;;  %p630_p8 = scmp.lt.s32.totalorder %s171_s19, %s628_s7 }
  0x43   : > { %p625_p9 = pnand %p623_p2, %p579_p5  ;;  %p631_p7 = scmp.lt.s32.totalorder %s629_s8, %s622_s25 }
  0x45   : > { %p626_p11 = pneg %p625_p9  ;;  %p632_p3 = por %p631_p7, %p630_p8 }
  0x47   : > { %p633_p6 = pnand %p632_p3, %p626_p11 }
  0x49   : > { %636 = shalt.err (!%p633_p6)
}
  0x4a   : > { %511 = dma.hbm_to_vmem [thread:$0]  (!%p825_p0), %s870_s16, 128, %s171_s19, %s157_s30  }
  0x4b   : > { %p1023_p13 = scmp.ne.s32.totalorder %s1022_s29, 0 }
  0x4c   : > { %s895_s15 = sand.u32 (!%p1023_p13), 1, %s707_s10   ;;  %p1024_p8 = scmp.ne.s32.totalorder (!%p1023_p13), %s1016_s21, 0 }
  0x4d   : > { %179 = sbr.rel (%p1023_p13) target bundleno = 183 (0xb7), region = 28  ;;  %s487_s18 = sshll.u32 (!%p1023_p13), %s895_s15, 1 }
  0x4e   : > { %s182_s4 = scalar_lea.sflag (!%p1023_p13), [#allocation3], %s895_s15  ;;  %s185_s6 = scalar_lea.vmem (!%p1023_p13), [#allocation2], %s487_s18 }
  0x54   : > { %690 = dma.done.wait (%p1024_p8), %s182_s4, 32  }
  0x55   : > { %692 = vsyncadd (%p1024_p8), %s182_s4, 4294967264  ;;  %s488_s5 = sshll.u32 %s895_s15, 3  ;;  %s191_s29 = scalar_lea.sflag [#allocation6], %s895_s15 }
  0x56   : > { %s194_s16 = scalar_lea.vmem [#allocation5], %s488_s5 }
  0x57   : > { %694 = dma.done.wait (%p1024_p8), %s191_s29, 128  }
  0x58   : > { %696 = vsyncadd (%p1024_p8), %s191_s29, 4294967168  ;;  %v240_v0 = vlaneseq  ;;  %v727_v1 = vmov 1966171168   ;;  %v728_v4 = vmov 1   ;;  %vm256_vm0 = vcmask 1043456   ;;  %v914_v8 = vld [vmem:[%s194_s16] sm:$0xff] }
  0x59   : > { %v238_v2 = vunpack.c.l.s4 %v727_v1  ;;  %v236_v5 = vcombine.low %v728_v4, %v728_v4  ;;  %v223_v9 = vld [vmem:[%s185_s6] sm:$0x3]  ;;  %v918_v11 = vcombine.high %v914_v8, %v914_v8  ;;  %v257_v12 = vsel %vm256_vm0, %v914_v8, -inf  ;;  %s936_s21 = scalar_lea.vmem [#allocation7], %s487_s18  ;;  %s498_s30 = sshll.u32 %s715_s12, 5 }
  0x5a   : > { %v911_v3 = vshrl.u32 %v240_v0, 7  ;;  %vm233_vm1 = vcmp.ne.s32.totalorder %v223_v9, 4294967196  ;;  %v258_v14 = vrot.slane %v257_v12, 4  ;;  %v729_v21 = vmov 0.0   ;;  %s366_s19 = sshll.u32 %s936_s21, 4  ;;  %s960_s27 = scalar_lea.hbm %s1012_s2, %s498_s30  ;;  %s955_s19 = int_to_ptr.vmem [resolvable:$true] %s366_s19 }
  0x5b   : > { %v239_v6 = vunpack.c.0.s8 %v238_v2  ;;  %v264_v15 = vsel %vm256_vm0, %v918_v11, -inf  ;;  %vm930_vm4 = vcmp.lt.s32.totalorder %v240_v0, 128  ;;  %v730_v53 = vmov 0   ;;  %s350_s28 = scalar_lea.sflag [#allocation4], %s895_s15  ;;  %s637_s25 = scalar_lea.vmem %s955_s19, 32 }
  0x5c   : > { %v259_v16 = vmax.f32 %v257_v12, %v258_v14  ;;  %v265_v17 = vrot.slane %v264_v15, 4  ;;  %v307_v52 = vsub.s32 0, %v911_v3  ;;  %v311_v55 = vsub.s32 1, %v911_v3  ;;  %p638_p0 = scmp.ne.s32.totalorder %s955_s19, %s637_s25  ;;  %p1029_p5 = scmp.ne.s32.totalorder %s1017_s22, 0 }
  0x5d   : > { %v242_v7 = vsub.s32 %v239_v6, %v911_v3  ;;  %s731_s12 = smov [#allocation7]  }
  0x5e   : > { %v260_v19 = vrot.slane %v259_v16, 2  ;;  %v266_v20 = vmax.f32 %v264_v15, %v265_v17  ;;  %v308_v56 = vrot.slane %v223_v9, %v307_v52  ;;  %v312_v58 = vrot.slane %v223_v9, %v311_v55  ;;  %p639_p7 = pnand %p638_p0, %p1029_p5  ;;  %s641_s3 = sshll.u32 %s731_s12, 4  ;;  %s642_s3 = int_to_ptr.vmem [resolvable:$false] %s641_s3 }
  0x5f   : > { %v243_v10 = vrot.slane %v236_v5, %v242_v7  ;;  %s643_s7 = scalar_lea.vmem %s642_s3, 64  ;;  %p644_p10 = scmp.lt.s32.totalorder %s955_s19, %s642_s3 }
  0x60   : > { %v261_v24 = vmax.f32 %v259_v16, %v260_v19  ;;  %v267_v25 = vrot.slane %v266_v20, 2  ;;  %vm313_vm5 = vcmp.eq.s32.totalorder %v911_v3, %v308_v56  ;;  %vm314_vm7 = vcmp.eq.s32.totalorder %v911_v3, %v312_v58  ;;  %p640_p4 = pneg %p639_p7  ;;  %p645_p12 = scmp.lt.s32.totalorder %s643_s7, %s637_s25 }
  0x61   : > { %v250_v13 = vrot.slane %v243_v10, %v242_v7 }
  0x62   : > { %v262_v28 = vrot.slane %v261_v24, 1  ;;  %v268_v29 = vmax.f32 %v266_v20, %v267_v25  ;;  %p646_p1 = por %p645_p12, %p644_p10 }
  0x63   : > { %vm251_vm2 = vcmp.ne.s32.totalorder %v250_v13, 0 }
  0x64   : > { %vm924_vm3 = vmand %vm233_vm1, %vm251_vm2  ;;  %v263_v30 = vmax.f32 %v261_v24, %v262_v28  ;;  %v269_v31 = vrot.slane %v268_v29, 1  ;;  %p647_p2 = pnand %p646_p1, %p640_p4 }
  0x65   : > { %v490_v22 = vsel %vm924_vm3, 1.0, %v729_v21  ;;  %v315_v54 = vsel %vm924_vm3, 1, %v730_v53 }
  0x66   : > { %v340_v23 = vrot.slane %v490_v22, 1  ;;  %v270_v32 = vmax.f32 %v268_v29, %v269_v31  ;;  %v319_v57 = vrot.slane %v315_v54, %v307_v52  ;;  %v323_v59 = vrot.slane %v315_v54, %v311_v55 }
  0x68   : > { %v342_v27 = vadd.f32 %v490_v22, %v340_v23  ;;  %v273_v33 = vcombine.low %v263_v30, %v270_v32  ;;  %vm324_vm6 = vcmp.eq.s32.totalorder %v319_v57, 1  ;;  %vm325_vm8 = vcmp.eq.s32.totalorder %v323_v59, 1 }
  0x69   : > { %vm326_vm9 = vmand %vm313_vm5, %vm324_vm6 }
  0x6a   : > { %348 = vst.msk [vmem:[%s936_s21 + $0x1] sm:$0x1] %vm930_vm4, %v342_v27  ;;  %v275_v34 = vsub.f32 %v914_v8, %v273_v33  ;;  %vm327_vm10 = vmand %vm314_vm7, %vm325_vm8 }
  0x6c   : > { %v276_v35 = vmul.f32 1.442695, %v275_v34 }
  0x6e   : > { %571 = vpow2.f32 %v276_v35 }
  0x78   : > { %v572_v36 = vpop.eup %571 }
  0x79   : > { %v279_v37 = vcombine.high %v572_v36, %v572_v36  ;;  %v281_v38 = vsel %vm256_vm0, %v572_v36, 0.0 }
  0x7a   : > { %v282_v39 = vrot.slane %v281_v38, 4 }
  0x7b   : > { %v288_v40 = vsel %vm256_vm0, %v279_v37, 0.0 }
  0x7c   : > { %v283_v41 = vadd.f32 %v282_v39, %v281_v38  ;;  %v289_v42 = vrot.slane %v288_v40, 4 }
  0x7e   : > { %v284_v43 = vrot.slane %v283_v41, 2  ;;  %v290_v44 = vadd.f32 %v289_v42, %v288_v40 }
  0x80   : > { %v285_v45 = vadd.f32 %v284_v43, %v283_v41  ;;  %v291_v46 = vrot.slane %v290_v44, 2 }
  0x82   : > { %v286_v47 = vrot.slane %v285_v45, 1  ;;  %v292_v48 = vadd.f32 %v291_v46, %v290_v44 }
  0x84   : > { %v287_v49 = vadd.f32 %v286_v47, %v285_v45  ;;  %v293_v50 = vrot.slane %v292_v48, 1 }
  0x86   : > { %v294_v51 = vadd.f32 %v293_v50, %v292_v48  ;;  %573 = vlog2.f32 %v287_v49 }
  0x88   : > { %575 = vlog2.f32 %v294_v51 }
  0x90   : > { %v574_v60 = vpop.eup %573 }
  0x91   : > { %v296_v61 = vmul.f32 0.6931472, %v574_v60 }
  0x92   : > { %v576_v62 = vpop.eup %575 }
  0x93   : > { %v298_v63 = vmul.f32 0.6931472, %v576_v62  ;;  %v299_v0 = vadd.f32 %v296_v61, %v263_v30 }
  0x95   : > { %v300_v1 = vadd.f32 %v298_v63, %v270_v32  ;;  %v301_v2 = vsub.f32 %v299_v0, %v914_v8 }
  0x97   : > { %v302_v4 = vsub.f32 %v300_v1, %v918_v11  ;;  %v328_v5 = vsel %vm326_vm9, %v301_v2, 0.0 }
  0x99   : > { %v329_v6 = vsel %vm327_vm10, %v302_v4, 0.0 }
  0x9a   : > { %v330_v7 = vadd.f32 %v329_v6, %v328_v5 }
  0x9c   : > { %v331_v9 = vsel %vm256_vm0, %v330_v7, 0.0 }
  0x9d   : > { %v332_v10 = vrot.slane %v331_v9, 4 }
  0x9f   : > { %v333_v12 = vadd.f32 %v332_v10, %v331_v9 }
  0xa1   : > { %v334_v3 = vrot.slane %v333_v12, 2 }
  0xa3   : > { %v335_v13 = vadd.f32 %v334_v3, %v333_v12 }
  0xa5   : > { %v336_v14 = vrot.slane %v335_v13, 1 }
  0xa7   : > { %v337_v15 = vadd.f32 %v336_v14, %v335_v13 }
  0xa9   : > { %347 = vst.msk [vmem:[%s936_s21] sm:$0x1] %vm930_vm4, %v337_v15 }
  0xaa   : > { %650 = shalt.err (!%p647_p2)
}
  0xab   : > { %s651_s8 = scalar_lea.hbm %s960_s27, 32  ;;  %s655_s4 = scalar_lea.hbm %s1012_s2, 64 }
  0xac   : > { %p652_p9 = scmp.ne.s32.totalorder %s960_s27, %s651_s8  ;;  %p656_p6 = scmp.lt.u32.totalorder %s960_s27, %s1012_s2 }
  0xad   : > { %p657_p13 = scmp.lt.u32.totalorder %s655_s4, %s651_s8  ;;  %p659_p0 = scmp.lt.u32.totalorder %s651_s8, %s960_s27 }
  0xae   : > { %p653_p11 = pnand %p652_p9, %p1029_p5 }
  0xaf   : > { %p658_p8 = por %p657_p13, %p656_p6 }
  0xb0   : > { %p654_p3 = pneg %p653_p11 }
  0xb1   : > { %p660_p7 = por %p659_p0, %p658_p8 }
  0xb3   : > { %p661_p4 = pnand %p660_p7, %p654_p3 }
  0xb5   : > { %664 = shalt.err (!%p661_p4)
}
  0xb6   : > { %503 = dma.vmem_to_hbm [thread:$0]  (%p1029_p5), %s955_s19, 32, %s960_s27, %s350_s28  }
  0xb7 PF: > { %s378_s29 = sand.u32 1, %s703_s9   ;;  %p1030_p10 = scmp.ne.s32.totalorder %s1018_s24, 0 }
  0xb8   : > { %p1031_p12 = scmp.ge.s32.totalorder %s723_s14, 2  ;;  %s379_s16 = scalar_lea.sflag [#allocation4], %s378_s29 }
  0xba   : > { %p513_p1 = pnand %p1031_p12, %p1030_p10 }
  0xbc   : > { %698 = dma.done.wait (!%p513_p1), %s379_s16, 32  }
  0xbd   : > { %700 = vsyncadd (!%p513_p1), %s379_s16, 4294967264  ;;  %s21_s14 = sadd.s32 1, %s723_s14   ;;  %s1032_s9 = smov %s707_s10 }
  0xbe   : > { %p18_p2 = scmp.ge.s32.totalorder %s21_s14, 4   ;;  %s1033_s10 = smov %s711_s11 }
  0xbf   : > { %s1034_s11 = smov %s803_s23  ;;  %s1035_s12 = smov %s719_s13 }
  0xc0   : > { %s1036_s13 = smov %s1038_s17  ;;  %20 = sbr.rel (!%p18_p2) target bundleno = 8 (0x8), region = 86 }
  0xc7   :  { %384 = vsyncpa [#allocation3], 1 }
  0xc8   :  { %386 = vsyncpa [#allocation3 + $0x1], 1 }
  0xc9   :  { %387 = vsyncpa [#allocation6], 1 }
  0xca   :  { %389 = vsyncpa [#allocation6 + $0x1], 1 }
  0xcb   :  { %390 = vsyncpa [#allocation4], 1 }
  0xcc   :  { %392 = vsyncpa [#allocation4 + $0x1], 1 }

</bundles_post_ra>
